<compile_context>
chip_gen: v7x
topology: tpu7x:2x2x1
jax: 0.10.0
libtpu: 0.0.40
codegen_flags: <defaults>
</compile_context>

<pallas_src>
import jax
import jax.numpy as jnp
from jax.experimental import pallas as pl
from jax.experimental.pallas import tpu as pltpu

H1, H2 = 100, 30          # logical hidden widths (nn.Linear(…,100), (100,30))
H1P, H2P = 128, 128       # lane-padded hidden widths (multiples of 128)


def _round_up(n, m):
    return ((n + m - 1) // m) * m


def _pad_to(x, rows, cols):
    r, c = x.shape
    return jnp.zeros((rows, cols), x.dtype).at[:r, :c].set(x)


# ---------------------------------------------------------------------------
# Kernel: fused 3-layer MLP with pre-scaled dropout masks; both siamese
# branches stacked along the batch dim.  Single grid step (everything is tiny
# and VMEM-resident: ~70 KB of weights + a few KB of activations).
# ---------------------------------------------------------------------------
def _prefnet_kernel(x_ref, m1_ref, m2_ref,
                    w1_ref, b1_ref, w2_ref, b2_ref, w3_ref, b3_ref,
                    o_ref):
    x = x_ref[...]                                                  # (Bp, Din)

    # fc1 -> dropout -> relu      (relu(m*h) == m*relu(h), m in {0, 2})
    h1 = jnp.dot(x, w1_ref[...], preferred_element_type=jnp.float32) + b1_ref[...]
    h1 = jnp.maximum(h1, 0.0) * m1_ref[...]                         # (Bp, 128)

    # fc2 -> relu -> dropout
    h2 = jnp.dot(h1, w2_ref[...], preferred_element_type=jnp.float32) + b2_ref[...]
    h2 = jnp.maximum(h2, 0.0) * m2_ref[...]                         # (Bp, 128)

    # fc3 (out_features = 1): lane reduce on VPU/XLU against one w3 row
    # instead of a 128-wide MXU matmul (127/128 lanes would be wasted).
    out = jnp.sum(h2 * w3_ref[...], axis=-1, keepdims=True) + b3_ref[...]
    o_ref[...] = out                                                # (Bp, 1)


# ---------------------------------------------------------------------------
# One-time parameter prep (hoisted out of the forward hot path).
# Weights are stored transposed as (in, out) so the kernel computes x @ W + b.
# ---------------------------------------------------------------------------
def prepare_params(params):
    w1, b1, w2, b2, w3, b3 = params
    n_input = w1.shape[0]
    w1p = _pad_to(w1, n_input, H1P)                 # K dim left unpadded
    b1p = _pad_to(b1.reshape(1, -1), 1, H1P)
    w2p = _pad_to(w2, H1P, H2P)
    b2p = _pad_to(b2.reshape(1, -1), 1, H2P)
    w3p = _pad_to(w3.reshape(-1)[None, :], 1, H2P)  # fc3 weights as one row
    b3p = b3.reshape(1, 1).astype(jnp.float32)
    return (w1p, b1p, w2p, b2p, w3p, b3p)


# ---------------------------------------------------------------------------
# Fused siamese forward: one pallas_call for both branches.
# ---------------------------------------------------------------------------
def prefnet_mc_dropout_forward(input1, input2, padded_params, key):
    w1p, b1p, w2p, b2p, w3p, b3p = padded_params
    B, n_input = input1.shape

    # Fuse both branches along the batch axis (one launch, one weight DMA).
    x = jnp.concatenate([input1, input2], axis=0)                   # (2B, Din)
    B2 = 2 * B
    Bp = _round_up(max(B2, 8), 8)
    if Bp != B2:
        x = jnp.zeros((Bp, n_input), x.dtype).at[:B2].set(x)

    # Independent MC-dropout masks per branch: distinct rows of one Bernoulli
    # stream, pre-scaled by 1/(1-p) = 2 so the kernel only multiplies.
    k1, k2 = jax.random.split(key)
    m1 = jax.random.bernoulli(k1, 0.5, (Bp, H1P)).astype(jnp.float32) * 2.0
    m2 = jax.random.bernoulli(k2, 0.5, (Bp, H2P)).astype(jnp.float32) * 2.0

    out = pl.pallas_call(
        _prefnet_kernel,
        out_shape=jax.ShapeDtypeStruct((Bp, 1), jnp.float32),
        grid=(1,),
        in_specs=[
            pl.BlockSpec((Bp, n_input), lambda i: (0, 0)),   # x (K unpadded)
            pl.BlockSpec((Bp, H1P),     lambda i: (0, 0)),   # dropout mask 1
            pl.BlockSpec((Bp, H2P),     lambda i: (0, 0)),   # dropout mask 2
            pl.BlockSpec((n_input, H1P), lambda i: (0, 0)),  # w1
            pl.BlockSpec((1, H1P),      lambda i: (0, 0)),   # b1
            pl.BlockSpec((H1P, H2P),    lambda i: (0, 0)),   # w2
            pl.BlockSpec((1, H2P),      lambda i: (0, 0)),   # b2
            pl.BlockSpec((1, H2P),      lambda i: (0, 0)),   # w3 (single row)
            pl.BlockSpec((1, 1),        lambda i: (0, 0)),   # b3
        ],
        out_specs=pl.BlockSpec((Bp, 1), lambda i: (0, 0)),
        compiler_params=pltpu.CompilerParams(
            dimension_semantics=("arbitrary",)),
    )(x, m1, m2, w1p, b1p, w2p, b2p, w3p, b3p)

    out1 = out[:B, :]
    out2 = out[B:B2, :]
    return out1, out2


# ---------------------------------------------------------------------------
# Deterministic nn.Linear-style init (uniform +/- 1/sqrt(fan_in)); weights
# returned transposed to (in, out) for the x @ W kernel layout.
# ---------------------------------------------------------------------------
def init_params(n_input, key):
    ks = jax.random.split(key, 6)

    def linear(kw, kb, fan_in, fan_out):
        bound = 1.0 / jnp.sqrt(fan_in)
        w = jax.random.uniform(kw, (fan_in, fan_out), jnp.float32, -bound, bound)
        b = jax.random.uniform(kb, (fan_out,), jnp.float32, -bound, bound)
        return w, b

    w1, b1 = linear(ks[0], ks[1], n_input, H1)
    w2, b2 = linear(ks[2], ks[3], H1, H2)
    w3, b3 = linear(ks[4], ks[5], H2, 1)
    return (w1, b1, w2, b2, w3, b3)


if __name__ == "__main__":
    n_input = 32
    batch = 8

    key = jax.random.PRNGKey(0)
    k1, k2, kp, kd = jax.random.split(key, 4)
    input1 = jax.random.normal(k1, (batch, n_input), jnp.float32)
    input2 = jax.random.normal(k2, (batch, n_input), jnp.float32)

    params = init_params(n_input, kp)
    padded_params = prepare_params(params)     # one-time, outside the hot path

    fwd = jax.jit(prefnet_mc_dropout_forward)
    out1, out2 = fwd(input1, input2, padded_params, kd)
    jax.block_until_ready((out1, out2))

    assert out1.shape == (batch, 1) and out2.shape == (batch, 1)
    assert out1.dtype == jnp.float32 and out2.dtype == jnp.float32
    assert bool(jnp.all(jnp.isfinite(out1))) and bool(jnp.all(jnp.isfinite(out2)))
    print("KERNEL_OK")
</pallas_src>

<mosaic_0001>
module attributes {stable_mosaic.version = 11 : i64} {
  func.func @_prefnet_kernel(%arg0: i32, %arg1: memref<16x32xf32, #tpu.memory_space<vmem>>, %arg2: memref<16x128xf32, #tpu.memory_space<vmem>>, %arg3: memref<16x128xf32, #tpu.memory_space<vmem>>, %arg4: memref<32x128xf32, #tpu.memory_space<vmem>>, %arg5: memref<1x128xf32, #tpu.memory_space<vmem>>, %arg6: memref<128x128xf32, #tpu.memory_space<vmem>>, %arg7: memref<1x128xf32, #tpu.memory_space<vmem>>, %arg8: memref<1x128xf32, #tpu.memory_space<vmem>>, %arg9: memref<1x1xf32, #tpu.memory_space<vmem>>, %arg10: memref<16x1xf32, #tpu.memory_space<vmem>>) attributes {dimension_semantics = [#tpu.dimension_semantics<arbitrary>], iteration_bounds = array<i64: 1>, scalar_prefetch = 0 : i64, scratch_operands = 0 : i64, tpu.core_type = #tpu.core_type<tc>, window_params = [{pipeline_mode = #tpu.pipeline_mode<synchronous>, transform_indices = @transform_0, window_bounds = array<i64: 16, 32>}, {pipeline_mode = #tpu.pipeline_mode<synchronous>, transform_indices = @transform_1, window_bounds = array<i64: 16, 128>}, {pipeline_mode = #tpu.pipeline_mode<synchronous>, transform_indices = @transform_2, window_bounds = array<i64: 16, 128>}, {pipeline_mode = #tpu.pipeline_mode<synchronous>, transform_indices = @transform_3, window_bounds = array<i64: 32, 128>}, {pipeline_mode = #tpu.pipeline_mode<synchronous>, transform_indices = @transform_4, window_bounds = array<i64: 1, 128>}, {pipeline_mode = #tpu.pipeline_mode<synchronous>, transform_indices = @transform_5, window_bounds = array<i64: 128, 128>}, {pipeline_mode = #tpu.pipeline_mode<synchronous>, transform_indices = @transform_6, window_bounds = array<i64: 1, 128>}, {pipeline_mode = #tpu.pipeline_mode<synchronous>, transform_indices = @transform_7, window_bounds = array<i64: 1, 128>}, {pipeline_mode = #tpu.pipeline_mode<synchronous>, transform_indices = @transform_8, window_bounds = array<i64: 1, 1>}, {pipeline_mode = #tpu.pipeline_mode<synchronous>, transform_indices = @transform_9, window_bounds = array<i64: 16, 1>}]} {
    %c0 = arith.constant 0 : index
    %c0_0 = arith.constant 0 : index
    %0 = vector.load %arg1[%c0, %c0_0] : memref<16x32xf32, #tpu.memory_space<vmem>>, vector<16x32xf32>
    %c0_1 = arith.constant 0 : index
    %c0_2 = arith.constant 0 : index
    %1 = vector.load %arg4[%c0_1, %c0_2] : memref<32x128xf32, #tpu.memory_space<vmem>>, vector<32x128xf32>
    %cst = arith.constant dense<0.000000e+00> : vector<16x128xf32>
    %2 = tpu.matmul %0, %1, %cst {dimension_numbers = #tpu.dot_dimension_numbers<[1], [0], [0], [1], [0, 0, 1, 1], [], []>} : vector<16x32xf32>, vector<32x128xf32>, vector<16x128xf32> -> vector<16x128xf32>
    %c0_3 = arith.constant 0 : index
    %c0_4 = arith.constant 0 : index
    %3 = vector.load %arg5[%c0_3, %c0_4] : memref<1x128xf32, #tpu.memory_space<vmem>>, vector<1x128xf32>
    %4 = vector.broadcast %3 : vector<1x128xf32> to vector<16x128xf32>
    %5 = arith.addf %2, %4 : vector<16x128xf32>
    %cst_5 = arith.constant 0.000000e+00 : f32
    %6 = vector.broadcast %cst_5 : f32 to vector<16x128xf32>
    %7 = arith.maximumf %5, %6 : vector<16x128xf32>
    %c0_6 = arith.constant 0 : index
    %c0_7 = arith.constant 0 : index
    %8 = vector.load %arg2[%c0_6, %c0_7] : memref<16x128xf32, #tpu.memory_space<vmem>>, vector<16x128xf32>
    %9 = arith.mulf %7, %8 : vector<16x128xf32>
    %c0_8 = arith.constant 0 : index
    %c0_9 = arith.constant 0 : index
    %10 = vector.load %arg6[%c0_8, %c0_9] : memref<128x128xf32, #tpu.memory_space<vmem>>, vector<128x128xf32>
    %cst_10 = arith.constant dense<0.000000e+00> : vector<16x128xf32>
    %11 = tpu.matmul %9, %10, %cst_10 {dimension_numbers = #tpu.dot_dimension_numbers<[1], [0], [0], [1], [0, 0, 1, 1], [], []>} : vector<16x128xf32>, vector<128x128xf32>, vector<16x128xf32> -> vector<16x128xf32>
    %c0_11 = arith.constant 0 : index
    %c0_12 = arith.constant 0 : index
    %12 = vector.load %arg7[%c0_11, %c0_12] : memref<1x128xf32, #tpu.memory_space<vmem>>, vector<1x128xf32>
    %13 = vector.broadcast %12 : vector<1x128xf32> to vector<16x128xf32>
    %14 = arith.addf %11, %13 : vector<16x128xf32>
    %cst_13 = arith.constant 0.000000e+00 : f32
    %15 = vector.broadcast %cst_13 : f32 to vector<16x128xf32>
    %16 = arith.maximumf %14, %15 : vector<16x128xf32>
    %c0_14 = arith.constant 0 : index
    %c0_15 = arith.constant 0 : index
    %17 = vector.load %arg3[%c0_14, %c0_15] : memref<16x128xf32, #tpu.memory_space<vmem>>, vector<16x128xf32>
    %18 = arith.mulf %16, %17 : vector<16x128xf32>
    %c0_16 = arith.constant 0 : index
    %c0_17 = arith.constant 0 : index
    %19 = vector.load %arg8[%c0_16, %c0_17] : memref<1x128xf32, #tpu.memory_space<vmem>>, vector<1x128xf32>
    %20 = vector.broadcast %19 : vector<1x128xf32> to vector<16x128xf32>
    %21 = arith.mulf %18, %20 : vector<16x128xf32>
    %cst_18 = arith.constant dense<0.000000e+00> : vector<16xf32>
    %22 = vector.multi_reduction <add>, %21, %cst_18 [1] : vector<16x128xf32> to vector<16xf32>
    %23 = vector.shape_cast %22 : vector<16xf32> to vector<16x1xf32>
    %c0_19 = arith.constant 0 : index
    %c0_20 = arith.constant 0 : index
    %24 = vector.load %arg9[%c0_19, %c0_20] : memref<1x1xf32, #tpu.memory_space<vmem>>, vector<1x1xf32>
    %25 = vector.broadcast %24 : vector<1x1xf32> to vector<16x1xf32>
    %26 = arith.addf %23, %25 : vector<16x1xf32>
    %c0_21 = arith.constant 0 : index
    %c0_22 = arith.constant 0 : index
    %27 = vector.load %arg10[%c0_21, %c0_22] : memref<16x1xf32, #tpu.memory_space<vmem>>, vector<16x1xf32>
    tpu.vector_store %arg10[%c0_21, %c0_22], %26 {strides = array<i32>} : memref<16x1xf32, #tpu.memory_space<vmem>>, vector<16x1xf32>,
    return
  }
  func.func @transform_0(%arg0: i32) -> (i32, i32) {
    %c0_i32 = arith.constant 0 : i32
    %c0_i32_0 = arith.constant 0 : i32
    %c0_i32_1 = arith.constant 0 : i32
    return %c0_i32, %c0_i32_0 : i32, i32
  }
  func.func @transform_1(%arg0: i32) -> (i32, i32) {
    %c0_i32 = arith.constant 0 : i32
    %c0_i32_0 = arith.constant 0 : i32
    %c0_i32_1 = arith.constant 0 : i32
    return %c0_i32, %c0_i32_0 : i32, i32
  }
  func.func @transform_2(%arg0: i32) -> (i32, i32) {
    %c0_i32 = arith.constant 0 : i32
    %c0_i32_0 = arith.constant 0 : i32
    %c0_i32_1 = arith.constant 0 : i32
    return %c0_i32, %c0_i32_0 : i32, i32
  }
  func.func @transform_3(%arg0: i32) -> (i32, i32) {
    %c0_i32 = arith.constant 0 : i32
    %c0_i32_0 = arith.constant 0 : i32
    %c0_i32_1 = arith.constant 0 : i32
    return %c0_i32, %c0_i32_0 : i32, i32
  }
  func.func @transform_4(%arg0: i32) -> (i32, i32) {
    %c0_i32 = arith.constant 0 : i32
    %c0_i32_0 = arith.constant 0 : i32
    %c0_i32_1 = arith.constant 0 : i32
    return %c0_i32, %c0_i32_0 : i32, i32
  }
  func.func @transform_5(%arg0: i32) -> (i32, i32) {
    %c0_i32 = arith.constant 0 : i32
    %c0_i32_0 = arith.constant 0 : i32
    %c0_i32_1 = arith.constant 0 : i32
    return %c0_i32, %c0_i32_0 : i32, i32
  }
  func.func @transform_6(%arg0: i32) -> (i32, i32) {
    %c0_i32 = arith.constant 0 : i32
    %c0_i32_0 = arith.constant 0 : i32
    %c0_i32_1 = arith.constant 0 : i32
    return %c0_i32, %c0_i32_0 : i32, i32
  }
  func.func @transform_7(%arg0: i32) -> (i32, i32) {
    %c0_i32 = arith.constant 0 : i32
    %c0_i32_0 = arith.constant 0 : i32
    %c0_i32_1 = arith.constant 0 : i32
    return %c0_i32, %c0_i32_0 : i32, i32
  }
  func.func @transform_8(%arg0: i32) -> (i32, i32) {
    %c0_i32 = arith.constant 0 : i32
    %c0_i32_0 = arith.constant 0 : i32
    %c0_i32_1 = arith.constant 0 : i32
    return %c0_i32, %c0_i32_0 : i32, i32
  }
  func.func @transform_9(%arg0: i32) -> (i32, i32) {
    %c0_i32 = arith.constant 0 : i32
    %c0_i32_0 = arith.constant 0 : i32
    %c0_i32_1 = arith.constant 0 : i32
    return %c0_i32, %c0_i32_0 : i32, i32
  }
}

</mosaic_0001>

<bundles_post_ra>
// kernel: prefnet_mc_dropout_forward.3
= control target key start
LH: loop header
LB: loop body
LE: loop exit
PB: predicated region body
PF: predicated region fallthrough
CT: control target
= control target key end

     0   :  { %vm47_vm0 = vcmask 261120   ;;  %vm261_vm1 = vcmask 7168   ;;  %s532_s3 = inlined_call_operand.vmem [shape: f32[32,128], index: 3, kind: input, shape index: {}]   ;;  %s533_s0 = inlined_call_operand.vmem [shape: f32[16,32], index: 0, kind: input, shape index: {}]   ;;  %s534_s5 = inlined_call_operand.vmem [shape: f32[128,128], index: 5, kind: input, shape index: {}]   ;;  %s535_s4 = inlined_call_operand.vmem [shape: f32[1,128], index: 4, kind: input, shape index: {}]   ;;  %s536_s1 = inlined_call_operand.vmem [shape: f32[16,128], index: 1, kind: input, shape index: {}]   ;;  %s537_s8 = inlined_call_operand.<no memory space> [shape: f32[1,1], index: 8, kind: input, shape index: {}]   ;;  %s538_s6 = inlined_call_operand.vmem [shape: f32[1,128], index: 6, kind: input, shape index: {}]   ;;  %s539_s2 = inlined_call_operand.vmem [shape: f32[16,128], index: 2, kind: input, shape index: {}]   ;;  %s540_s7 = inlined_call_operand.vmem [shape: f32[1,128], index: 7, kind: input, shape index: {}]   ;;  %s541_s9 = inlined_call_operand.vmem [shape: f32[16,1], index: 9, kind: output, shape index: {}]  }
   0x1   :  { %v36_v0 = vld [vmem:[%s532_s3] sm:$0xff]  ;;  %v37_v1 = vld [vmem:[%s532_s3 + $0x8] sm:$0xff]  ;;  %v38_v2 = vld [vmem:[%s532_s3 + $0x10] sm:$0xff]  ;;  %v14_v43 = vstv %s537_s8 }
   0x2   :  { %v344_v3 = vpack.c.bf16 %v37_v1, %v36_v0  ;;  %v39_v4 = vld [vmem:[%s532_s3 + $0x18] sm:$0xff]  ;;  %v34_v5 = vld [vmem:[%s533_s0] sm:$0xff]  ;;  %v136_v8 = vld [vmem:[%s534_s5 + $0x8] sm:$0xff]  ;;  %15 = vst [vmem:[#allocation2] sm:$0x1] %v14_v43 }
   0x3   :  { %v348_v6 = vpack.c.bf16 %v39_v4, %v38_v2  ;;  %306 = vmatprep.mubr.msk.f32.mxu0 %vm47_vm0, %v34_v5  ;;  %v135_v7 = vld [vmem:[%s534_s5] sm:$0xff]  ;;  %v137_v9 = vld [vmem:[%s534_s5 + $0x10] sm:$0xff]  ;;  %v138_v11 = vld [vmem:[%s534_s5 + $0x18] sm:$0xff] }
   0x4   :  { %345 = vmatprep.subr.bf16.mxu0 %v344_v3  ;;  %v352_v10 = vpack.c.bf16 %v136_v8, %v135_v7  ;;  %v356_v12 = vpack.c.bf16 %v138_v11, %v137_v9  ;;  %v139_v13 = vld [vmem:[%s534_s5 + $0x20] sm:$0xff]  ;;  %v140_v14 = vld [vmem:[%s534_s5 + $0x28] sm:$0xff]  ;;  %v141_v17 = vld [vmem:[%s534_s5 + $0x30] sm:$0xff] }
   0x5   :  { %347 = vmatpush3.bf16.msra.mxu0 %v344_v3  ;;  %v360_v15 = vpack.c.bf16 %v140_v14, %v139_v13  ;;  %v35_v16 = vld [vmem:[%s533_s0 + $0x8] sm:$0xff]  ;;  %v142_v18 = vld [vmem:[%s534_s5 + $0x38] sm:$0xff]  ;;  %v143_v20 = vld [vmem:[%s534_s5 + $0x40] sm:$0xff] }
   0x6   :  { %349 = vmatprep.subr.bf16.mxu0 %v348_v6  ;;  %353 = vmatprep.subr.bf16.mxu1 %v352_v10  ;;  %v364_v19 = vpack.c.bf16 %v142_v18, %v141_v17  ;;  %v144_v21 = vld [vmem:[%s534_s5 + $0x48] sm:$0xff]  ;;  %v145_v23 = vld [vmem:[%s534_s5 + $0x50] sm:$0xff]  ;;  %v146_v24 = vld [vmem:[%s534_s5 + $0x58] sm:$0xff] }
   0x7   :  { %355 = vmatpush3.bf16.msra.mxu1 %v352_v10  ;;  %v368_v22 = vpack.c.bf16 %v144_v21, %v143_v20  ;;  %v372_v25 = vpack.c.bf16 %v146_v24, %v145_v23  ;;  %v147_v26 = vld [vmem:[%s534_s5 + $0x60] sm:$0xff]  ;;  %v148_v27 = vld [vmem:[%s534_s5 + $0x68] sm:$0xff]  ;;  %v149_v29 = vld [vmem:[%s534_s5 + $0x70] sm:$0xff] }
   0x8   :  { %357 = vmatprep.subr.bf16.mxu1 %v356_v12  ;;  %v376_v28 = vpack.c.bf16 %v148_v27, %v147_v26  ;;  %v150_v30 = vld [vmem:[%s534_s5 + $0x78] sm:$0xff]  ;;  %v268_v32 = vld [vmem:[%s535_s4] ss:$0 sm:$0xff]  ;;  %v132_v40 = vld [vmem:[%s536_s1 + $0x8] sm:$0xff] }
   0x9   :  { %351 = vmatpush3.bf16.msra.mxu0 %v348_v6  ;;  %v380_v31 = vpack.c.bf16 %v150_v30, %v149_v29  ;;  %v131_v38 = vld [vmem:[%s536_s1] sm:$0xff]  ;;  %v236_v52 = vld [vmem:[%s539_s2 + $0x8] sm:$0xff] }
   0xa   :  { %v271_v44 = vld [vmem:[%s538_s6] ss:$0 sm:$0xff] }
   0xb   :  { %359 = vmatpush3.bf16.msra.mxu1 %v356_v12  ;;  %v235_v49 = vld [vmem:[%s539_s2] sm:$0xff] }
   0xc   :  { %307 = vmatmul.mubr.msk.f32.vlgmr.msra.gmra.mrb[0].mxu0 %vm47_vm0, %v35_v16  ;;  %361 = vmatprep.subr.bf16.mxu1 %v360_v15  ;;  %v272_v53 = vld [vmem:[%s540_s7] ss:$0 sm:$0xff] }
   0xd   :  { %v273_v58 = vld [vmem:[#allocation2] ss:$0 sm:$0xff] }
   0xf   :  { %363 = vmatpush3.bf16.msra.mxu1 %v360_v15 }
  0x10   :  { %365 = vmatprep.subr.bf16.mxu1 %v364_v19 }
  0x13   :  { %367 = vmatpush3.bf16.msra.mxu1 %v364_v19 }
  0x14   :  { %369 = vmatprep.subr.bf16.mxu1 %v368_v22 }
  0x17   :  { %371 = vmatpush3.bf16.msra.mxu1 %v368_v22 }
  0x18   :  { %373 = vmatprep.subr.bf16.mxu1 %v372_v25 }
  0x1b   :  { %375 = vmatpush3.bf16.msra.mxu1 %v372_v25 }
  0x1c   :  { %377 = vmatprep.subr.bf16.mxu1 %v376_v28 }
  0x1f   :  { %379 = vmatpush3.bf16.msra.mxu1 %v376_v28 }
  0x20   :  { %381 = vmatprep.subr.bf16.mxu1 %v380_v31 }
  0x23   :  { %383 = vmatpush3.bf16.msra.mxu1 %v380_v31 }
  0xdf   :  { %v308_v33 = vpop.f32.mrb[0].mxu0 }
  0xe0   :  { %v126_v34 = vadd.f32 %v308_v33, %v268_v32  ;;  %v120_v35 = vpop.f32.mrb[1].mxu0 }
  0xe1   :  { %v121_v36 = vadd.f32 %v268_v32, %v120_v35 }
  0xe2   :  { %v130_v37 = vmax.f32 %v126_v34, 0.0 }
  0xe3   :  { %v129_v39 = vmax.f32 %v121_v36, 0.0 }
  0xe4   :  { %v134_v42 = vmul.f32 %v132_v40, %v130_v37 }
  0xe5   :  { %v133_v41 = vmul.f32 %v131_v38, %v129_v39 }
  0xe7   :  { %341 = vmatprep.mubr.f32.mxu1 %v133_v41 }
  0xe8   :  { %342 = vmatmul.mubr.f32.vlgmr.msra.gmra.mrb[0].mxu1 %v134_v42 }
 0x1bb   :  { %v343_v45 = vpop.f32.mrb[0].mxu1 }
 0x1bc   :  { %v230_v46 = vadd.f32 %v343_v45, %v271_v44  ;;  %v224_v47 = vpop.f32.mrb[1].mxu1 }
 0x1bd   :  { %v225_v48 = vadd.f32 %v271_v44, %v224_v47 }
 0x1be   :  { %v234_v50 = vmax.f32 %v230_v46, 0.0 }
 0x1bf   :  { %v233_v51 = vmax.f32 %v225_v48, 0.0 }
 0x1c0   :  { %v238_v55 = vmul.f32 %v236_v52, %v234_v50 }
 0x1c1   :  { %v237_v54 = vmul.f32 %v235_v49, %v233_v51 }
 0x1c2   :  { %v247_v57 = vmul.f32 %v272_v53, %v238_v55 }
 0x1c3   :  { %v246_v56 = vmul.f32 %v272_v53, %v237_v54 }
 0x1c5   :  { %248 = vadd.xlane.f32.xlu0 %v246_v56 }
 0x1c9   :  { %250 = vadd.xlane.f32.xlu0 %v247_v57 }
 0x252   :  { %v249_v59 = vpop.xlane.xlu0 %248 }
 0x253   :  { %v259_v60 = vadd.f32 %v273_v58, %v249_v59 }
 0x255   :  { %262 = vst.msk [vmem:[%s541_s9] sm:$0xff] %vm261_vm1, %v259_v60 }
 0x256   :  { %v251_v61 = vpop.xlane.xlu0 %250 }
 0x257   :  { %v260_v62 = vadd.f32 %v273_v58, %v251_v61 }
 0x259   :  { %263 = vst.msk [vmem:[%s541_s9 + $0x8] sm:$0xff] %vm261_vm1, %v260_v62 }

</bundles_post_ra>
